<compile_context>
chip_gen: v6e
topology: v6e:2x2x1
jax: 0.10.0
libtpu: 0.0.40
codegen_flags: <defaults>
</compile_context>

<pallas_src>
import jax
import jax.numpy as jnp
from jax import lax
from jax.experimental import pallas as pl
from jax.experimental.pallas import tpu as pltpu

KH = KW = 3     # conv / pool kernel size
LANES = 128     # vreg lane width


def conv_avgpool_kernel(x_ref, w_ref, b_ref, o_ref):
    # x_ref: (Cin, H, 128) f32 -- each input channel's columns replicated once
    #        per output channel along lanes ([x | x]); exactly 128 lanes wide.
    # w_ref: (Cin*KH*KW, 128) f32 -- conv weights pre-scaled by 1/9, one row per
    #        (ci, di, dj) tap, replicated per lane-half, ZEROED on invalid lanes.
    # b_ref: (1, 128) f32 -- bias/9 per lane-half, ZEROED on invalid lanes.
    # o_ref: (Ho, 128) f32 -- pooled output, channels packed along lanes.
    Cin, H, _ = x_ref.shape
    Ho = o_ref.shape[0]

    # ---- 3x3 VALID conv as per-di partial sums over row-aligned slabs. ----
    parts = [None, None, None]                       # one (H,128) slab per di
    for ci in range(Cin):
        x0 = x_ref[ci]                               # (H,128), aligned load
        for dj in range(KW):
            # Column shift on the XLU, hoisted out of the di loop.  The lane
            # wraparound only ever lands on lanes whose weight is zero.
            xdj = x0 if dj == 0 else pltpu.roll(x0, LANES - dj, axis=1)
            for di in range(KH):
                k = (ci * KH + di) * KW + dj
                wk = w_ref[k:k + 1, :]               # (1,128) tap weights;
                t = xdj * wk                         # sublane-broadcast FMA
                parts[di] = t if parts[di] is None else parts[di] + t
    a0, a1, a2 = parts

    # ---- Combine the three row offsets + bias -> conv rows (Ho, 128). ----
    # Invalid lanes come out exactly 0 (weights & bias zeroed in the wrapper),
    # which is precisely the zero padding the pool's horizontal pass needs.
    acc = b_ref[...] + a0[0:Ho] + a1[1:Ho + 1] + a2[2:Ho + 2]

    # ---- 3x3 avg pool, stride 1, pad 1 (1/9 already folded into acc). ----
    # Horizontal 3-tap sum via lane rolls; wraps land on zeroed lanes.
    colsum = (acc
              + pltpu.roll(acc, 1, axis=1)
              + pltpu.roll(acc, LANES - 1, axis=1))
    # Vertical 3-tap sum with zero padding at rows -1 / Ho, accumulated
    # directly on the output ref (no concatenated padded temp buffer).
    o_ref[...] = colsum
    o_ref[0:Ho - 1, :] = o_ref[0:Ho - 1, :] + colsum[1:Ho, :]
    o_ref[1:Ho, :] = o_ref[1:Ho, :] + colsum[0:Ho - 1, :]


@jax.jit
def model_forward(x, w, b):
    """x: (1, Cin, H, W), w: (Cout, Cin, 3, 3), b: (Cout,) -> (1, Cout, H-2, W-2)."""
    N, Cin, H, W = x.shape
    Cout = w.shape[0]
    assert N == 1, "kernel specialized to batch size 1 (matches the module's input)"
    assert w.shape[2] == KH and w.shape[3] == KW
    assert Cout * W <= LANES, "channel-packed lane layout requires Cout*W <= 128"
    Ho, Wo = H - KH + 1, W - KW + 1

    f32 = jnp.float32
    x = x.astype(f32)
    w = w.astype(f32)
    b = b.astype(f32)

    # Fold the 1/9 pool normalization into weights & bias (the whole op is linear).
    inv9 = 1.0 / (KH * KW)

    # A packed lane l = co*W + j holds a real conv output iff j < Wo.
    lane = jnp.arange(Cout * W)
    valid = (lane % W) < Wo

    # Input: each channel's columns duplicated once per output channel along
    # lanes, padded (if needed) to exactly 128 lanes.
    xd = jnp.concatenate([x[0]] * Cout, axis=-1)                  # (Cin, H, Cout*W)
    xd = jnp.pad(xd, ((0, 0), (0, 0), (0, LANES - Cout * W)))     # (Cin, H, 128)

    # Weights: one 128-lane row per (ci, di, dj) tap; lane-half `co` carries
    # w[co]/9.  Invalid lanes are zeroed here (replaces the former mask input).
    wt = jnp.transpose(w * inv9, (1, 2, 3, 0)).reshape(Cin * KH * KW, Cout)
    w_packed = jnp.repeat(wt, W, axis=1)                          # (Cin*9, Cout*W)
    w_packed = jnp.where(valid[None, :], w_packed, 0.0)
    w_packed = jnp.pad(w_packed, ((0, 0), (0, LANES - Cout * W)))

    b_packed = jnp.where(valid, jnp.repeat(b * inv9, W), 0.0)
    b_packed = jnp.pad(b_packed, (0, LANES - Cout * W))[None, :]  # (1, 128)

    packed = pl.pallas_call(
        conv_avgpool_kernel,
        out_shape=jax.ShapeDtypeStruct((Ho, LANES), f32),
        in_specs=[pl.BlockSpec(memory_space=pltpu.MemorySpace.VMEM)] * 3,
        out_specs=pl.BlockSpec(memory_space=pltpu.MemorySpace.VMEM),
        compiler_params=pltpu.CompilerParams(vmem_limit_bytes=4 * 1024 * 1024),
    )(xd, w_packed, b_packed)

    # Unpack the lane-dense slab -> (1, Cout, Ho, Wo).  Pure layout plumbing,
    # fused with the rest of the wrapper under the jit.
    chans = [packed[:, co * W: co * W + Wo] for co in range(Cout)]
    return jnp.stack(chans, axis=0)[None]


def reference_forward(x, w, b):
    v1 = lax.conv_general_dilated(
        x, w, window_strides=(1, 1), padding="VALID",
        dimension_numbers=("NCHW", "OIHW", "NCHW"),
    ) + b.reshape(1, -1, 1, 1)
    pool_sum = lax.reduce_window(
        v1, 0.0, lax.add,
        window_dimensions=(1, 1, 3, 3),
        window_strides=(1, 1, 1, 1),
        padding=((0, 0), (0, 0), (1, 1), (1, 1)),
    )
    return pool_sum / 9.0  # AvgPool2d default count_include_pad=True -> always /9


if __name__ == "__main__":
    key = jax.random.PRNGKey(0)
    kx, kw, kb = jax.random.split(key, 3)

    # Shapes implied by the module: Conv2d(2, 2, 3) on a (1, 2, 64, 64) input.
    x = jax.random.normal(kx, (1, 2, 64, 64), dtype=jnp.float32)
    w = jax.random.normal(kw, (2, 2, 3, 3), dtype=jnp.float32) * 0.2
    b = jax.random.normal(kb, (2,), dtype=jnp.float32) * 0.1

    out = jax.block_until_ready(model_forward(x, w, b))
    ref = reference_forward(x, w, b)

    assert out.shape == (1, 2, 62, 62), out.shape
    err = float(jnp.max(jnp.abs(out - ref)))
    assert jnp.allclose(out, ref, atol=1e-4, rtol=1e-4), err

    print("KERNEL_OK")
</pallas_src>

<mosaic_0001>
module attributes {stable_mosaic.version = 11 : i64} {
  func.func @conv_avgpool_kernel(%arg0: memref<2x64x128xf32, #tpu.memory_space<vmem>>, %arg1: memref<18x128xf32, #tpu.memory_space<vmem>>, %arg2: memref<1x128xf32, #tpu.memory_space<vmem>>, %arg3: memref<62x128xf32, #tpu.memory_space<vmem>>) attributes {dimension_semantics = [], scalar_prefetch = 0 : i64, scratch_operands = 0 : i64, tpu.core_type = #tpu.core_type<tc>} {
    %c0 = arith.constant 0 : index
    %c0_0 = arith.constant 0 : index
    %c0_1 = arith.constant 0 : index
    %0 = vector.load %arg0[%c0, %c0_0, %c0_1] : memref<2x64x128xf32, #tpu.memory_space<vmem>>, vector<1x64x128xf32>
    %1 = vector.shape_cast %0 : vector<1x64x128xf32> to vector<64x128xf32>
    %c0_2 = arith.constant 0 : index
    %c0_3 = arith.constant 0 : index
    %2 = vector.load %arg1[%c0_2, %c0_3] : memref<18x128xf32, #tpu.memory_space<vmem>>, vector<1x128xf32>
    %3 = vector.broadcast %2 : vector<1x128xf32> to vector<64x128xf32>
    %4 = arith.mulf %1, %3 : vector<64x128xf32>
    %c3 = arith.constant 3 : index
    %c0_4 = arith.constant 0 : index
    %5 = vector.load %arg1[%c3, %c0_4] : memref<18x128xf32, #tpu.memory_space<vmem>>, vector<1x128xf32>
    %6 = vector.broadcast %5 : vector<1x128xf32> to vector<64x128xf32>
    %7 = arith.mulf %1, %6 : vector<64x128xf32>
    %c6 = arith.constant 6 : index
    %c0_5 = arith.constant 0 : index
    %8 = vector.load %arg1[%c6, %c0_5] : memref<18x128xf32, #tpu.memory_space<vmem>>, vector<1x128xf32>
    %9 = vector.broadcast %8 : vector<1x128xf32> to vector<64x128xf32>
    %10 = arith.mulf %1, %9 : vector<64x128xf32>
    %c127_i32 = arith.constant 127 : i32
    %11 = tpu.dynamic_rotate %1 by %c127_i32 dim 1 : vector<64x128xf32>, i32 -> vector<64x128xf32>
    %c1 = arith.constant 1 : index
    %c0_6 = arith.constant 0 : index
    %12 = vector.load %arg1[%c1, %c0_6] : memref<18x128xf32, #tpu.memory_space<vmem>>, vector<1x128xf32>
    %13 = vector.broadcast %12 : vector<1x128xf32> to vector<64x128xf32>
    %14 = arith.mulf %11, %13 : vector<64x128xf32>
    %15 = arith.addf %4, %14 : vector<64x128xf32>
    %c4 = arith.constant 4 : index
    %c0_7 = arith.constant 0 : index
    %16 = vector.load %arg1[%c4, %c0_7] : memref<18x128xf32, #tpu.memory_space<vmem>>, vector<1x128xf32>
    %17 = vector.broadcast %16 : vector<1x128xf32> to vector<64x128xf32>
    %18 = arith.mulf %11, %17 : vector<64x128xf32>
    %19 = arith.addf %7, %18 : vector<64x128xf32>
    %c7 = arith.constant 7 : index
    %c0_8 = arith.constant 0 : index
    %20 = vector.load %arg1[%c7, %c0_8] : memref<18x128xf32, #tpu.memory_space<vmem>>, vector<1x128xf32>
    %21 = vector.broadcast %20 : vector<1x128xf32> to vector<64x128xf32>
    %22 = arith.mulf %11, %21 : vector<64x128xf32>
    %23 = arith.addf %10, %22 : vector<64x128xf32>
    %c126_i32 = arith.constant 126 : i32
    %24 = tpu.dynamic_rotate %1 by %c126_i32 dim 1 : vector<64x128xf32>, i32 -> vector<64x128xf32>
    %c2 = arith.constant 2 : index
    %c0_9 = arith.constant 0 : index
    %25 = vector.load %arg1[%c2, %c0_9] : memref<18x128xf32, #tpu.memory_space<vmem>>, vector<1x128xf32>
    %26 = vector.broadcast %25 : vector<1x128xf32> to vector<64x128xf32>
    %27 = arith.mulf %24, %26 : vector<64x128xf32>
    %28 = arith.addf %15, %27 : vector<64x128xf32>
    %c5 = arith.constant 5 : index
    %c0_10 = arith.constant 0 : index
    %29 = vector.load %arg1[%c5, %c0_10] : memref<18x128xf32, #tpu.memory_space<vmem>>, vector<1x128xf32>
    %30 = vector.broadcast %29 : vector<1x128xf32> to vector<64x128xf32>
    %31 = arith.mulf %24, %30 : vector<64x128xf32>
    %32 = arith.addf %19, %31 : vector<64x128xf32>
    %c8 = arith.constant 8 : index
    %c0_11 = arith.constant 0 : index
    %33 = vector.load %arg1[%c8, %c0_11] : memref<18x128xf32, #tpu.memory_space<vmem>>, vector<1x128xf32>
    %34 = vector.broadcast %33 : vector<1x128xf32> to vector<64x128xf32>
    %35 = arith.mulf %24, %34 : vector<64x128xf32>
    %36 = arith.addf %23, %35 : vector<64x128xf32>
    %c1_12 = arith.constant 1 : index
    %c0_13 = arith.constant 0 : index
    %c0_14 = arith.constant 0 : index
    %37 = vector.load %arg0[%c1_12, %c0_13, %c0_14] : memref<2x64x128xf32, #tpu.memory_space<vmem>>, vector<1x64x128xf32>
    %38 = vector.shape_cast %37 : vector<1x64x128xf32> to vector<64x128xf32>
    %c9 = arith.constant 9 : index
    %c0_15 = arith.constant 0 : index
    %39 = vector.load %arg1[%c9, %c0_15] : memref<18x128xf32, #tpu.memory_space<vmem>>, vector<1x128xf32>
    %40 = vector.broadcast %39 : vector<1x128xf32> to vector<64x128xf32>
    %41 = arith.mulf %38, %40 : vector<64x128xf32>
    %42 = arith.addf %28, %41 : vector<64x128xf32>
    %c12 = arith.constant 12 : index
    %c0_16 = arith.constant 0 : index
    %43 = vector.load %arg1[%c12, %c0_16] : memref<18x128xf32, #tpu.memory_space<vmem>>, vector<1x128xf32>
    %44 = vector.broadcast %43 : vector<1x128xf32> to vector<64x128xf32>
    %45 = arith.mulf %38, %44 : vector<64x128xf32>
    %46 = arith.addf %32, %45 : vector<64x128xf32>
    %c15 = arith.constant 15 : index
    %c0_17 = arith.constant 0 : index
    %47 = vector.load %arg1[%c15, %c0_17] : memref<18x128xf32, #tpu.memory_space<vmem>>, vector<1x128xf32>
    %48 = vector.broadcast %47 : vector<1x128xf32> to vector<64x128xf32>
    %49 = arith.mulf %38, %48 : vector<64x128xf32>
    %50 = arith.addf %36, %49 : vector<64x128xf32>
    %c127_i32_18 = arith.constant 127 : i32
    %51 = tpu.dynamic_rotate %38 by %c127_i32_18 dim 1 : vector<64x128xf32>, i32 -> vector<64x128xf32>
    %c10 = arith.constant 10 : index
    %c0_19 = arith.constant 0 : index
    %52 = vector.load %arg1[%c10, %c0_19] : memref<18x128xf32, #tpu.memory_space<vmem>>, vector<1x128xf32>
    %53 = vector.broadcast %52 : vector<1x128xf32> to vector<64x128xf32>
    %54 = arith.mulf %51, %53 : vector<64x128xf32>
    %55 = arith.addf %42, %54 : vector<64x128xf32>
    %c13 = arith.constant 13 : index
    %c0_20 = arith.constant 0 : index
    %56 = vector.load %arg1[%c13, %c0_20] : memref<18x128xf32, #tpu.memory_space<vmem>>, vector<1x128xf32>
    %57 = vector.broadcast %56 : vector<1x128xf32> to vector<64x128xf32>
    %58 = arith.mulf %51, %57 : vector<64x128xf32>
    %59 = arith.addf %46, %58 : vector<64x128xf32>
    %c16 = arith.constant 16 : index
    %c0_21 = arith.constant 0 : index
    %60 = vector.load %arg1[%c16, %c0_21] : memref<18x128xf32, #tpu.memory_space<vmem>>, vector<1x128xf32>
    %61 = vector.broadcast %60 : vector<1x128xf32> to vector<64x128xf32>
    %62 = arith.mulf %51, %61 : vector<64x128xf32>
    %63 = arith.addf %50, %62 : vector<64x128xf32>
    %c126_i32_22 = arith.constant 126 : i32
    %64 = tpu.dynamic_rotate %38 by %c126_i32_22 dim 1 : vector<64x128xf32>, i32 -> vector<64x128xf32>
    %c11 = arith.constant 11 : index
    %c0_23 = arith.constant 0 : index
    %65 = vector.load %arg1[%c11, %c0_23] : memref<18x128xf32, #tpu.memory_space<vmem>>, vector<1x128xf32>
    %66 = vector.broadcast %65 : vector<1x128xf32> to vector<64x128xf32>
    %67 = arith.mulf %64, %66 : vector<64x128xf32>
    %68 = arith.addf %55, %67 : vector<64x128xf32>
    %c14 = arith.constant 14 : index
    %c0_24 = arith.constant 0 : index
    %69 = vector.load %arg1[%c14, %c0_24] : memref<18x128xf32, #tpu.memory_space<vmem>>, vector<1x128xf32>
    %70 = vector.broadcast %69 : vector<1x128xf32> to vector<64x128xf32>
    %71 = arith.mulf %64, %70 : vector<64x128xf32>
    %72 = arith.addf %59, %71 : vector<64x128xf32>
    %c17 = arith.constant 17 : index
    %c0_25 = arith.constant 0 : index
    %73 = vector.load %arg1[%c17, %c0_25] : memref<18x128xf32, #tpu.memory_space<vmem>>, vector<1x128xf32>
    %74 = vector.broadcast %73 : vector<1x128xf32> to vector<64x128xf32>
    %75 = arith.mulf %64, %74 : vector<64x128xf32>
    %76 = arith.addf %63, %75 : vector<64x128xf32>
    %c0_26 = arith.constant 0 : index
    %c0_27 = arith.constant 0 : index
    %77 = vector.load %arg2[%c0_26, %c0_27] : memref<1x128xf32, #tpu.memory_space<vmem>>, vector<1x128xf32>
    %78 = vector.extract_strided_slice %68 {offsets = [0, 0], sizes = [62, 128], strides = [1, 1]} : vector<64x128xf32> to vector<62x128xf32>
    %79 = vector.broadcast %77 : vector<1x128xf32> to vector<62x128xf32>
    %80 = arith.addf %79, %78 : vector<62x128xf32>
    %81 = vector.extract_strided_slice %72 {offsets = [1, 0], sizes = [62, 128], strides = [1, 1]} : vector<64x128xf32> to vector<62x128xf32>
    %82 = arith.addf %80, %81 : vector<62x128xf32>
    %83 = vector.extract_strided_slice %76 {offsets = [2, 0], sizes = [62, 128], strides = [1, 1]} : vector<64x128xf32> to vector<62x128xf32>
    %84 = arith.addf %82, %83 : vector<62x128xf32>
    %c1_i32 = arith.constant 1 : i32
    %85 = tpu.dynamic_rotate %84 by %c1_i32 dim 1 : vector<62x128xf32>, i32 -> vector<62x128xf32>
    %86 = arith.addf %84, %85 : vector<62x128xf32>
    %c127_i32_28 = arith.constant 127 : i32
    %87 = tpu.dynamic_rotate %84 by %c127_i32_28 dim 1 : vector<62x128xf32>, i32 -> vector<62x128xf32>
    %88 = arith.addf %86, %87 : vector<62x128xf32>
    %c0_29 = arith.constant 0 : index
    %c0_30 = arith.constant 0 : index
    %89 = vector.load %arg3[%c0_29, %c0_30] : memref<62x128xf32, #tpu.memory_space<vmem>>, vector<62x128xf32>
    tpu.vector_store %arg3[%c0_29, %c0_30], %88 {strides = array<i32>} : memref<62x128xf32, #tpu.memory_space<vmem>>, vector<62x128xf32>,
    %c0_31 = arith.constant 0 : index
    %c0_32 = arith.constant 0 : index
    %90 = vector.load %arg3[%c0_31, %c0_32] : memref<62x128xf32, #tpu.memory_space<vmem>>, vector<61x128xf32>
    %91 = vector.extract_strided_slice %88 {offsets = [1, 0], sizes = [61, 128], strides = [1, 1]} : vector<62x128xf32> to vector<61x128xf32>
    %92 = arith.addf %90, %91 : vector<61x128xf32>
    %c0_33 = arith.constant 0 : index
    %c0_34 = arith.constant 0 : index
    %93 = vector.load %arg3[%c0_33, %c0_34] : memref<62x128xf32, #tpu.memory_space<vmem>>, vector<61x128xf32>
    tpu.vector_store %arg3[%c0_33, %c0_34], %92 {strides = array<i32>} : memref<62x128xf32, #tpu.memory_space<vmem>>, vector<61x128xf32>,
    %c1_35 = arith.constant 1 : index
    %c0_36 = arith.constant 0 : index
    %94 = vector.load %arg3[%c1_35, %c0_36] : memref<62x128xf32, #tpu.memory_space<vmem>>, vector<61x128xf32>
    %95 = vector.extract_strided_slice %88 {offsets = [0, 0], sizes = [61, 128], strides = [1, 1]} : vector<62x128xf32> to vector<61x128xf32>
    %96 = arith.addf %94, %95 : vector<61x128xf32>
    %c1_37 = arith.constant 1 : index
    %c0_38 = arith.constant 0 : index
    %97 = vector.load %arg3[%c1_37, %c0_38] : memref<62x128xf32, #tpu.memory_space<vmem>>, vector<61x128xf32>
    tpu.vector_store %arg3[%c1_37, %c0_38], %96 {strides = array<i32>} : memref<62x128xf32, #tpu.memory_space<vmem>>, vector<61x128xf32>,
    return
  }
}

</mosaic_0001>

<bundles_post_ra>
// kernel: model_forward.1
= control target key start
LH: loop header
LB: loop body
LE: loop exit
PB: predicated region body
PF: predicated region fallthrough
CT: control target
= control target key end

     0   :  { %s713_s16 = smov 127   ;;  %s714_s29 = smov 126   ;;  %vm472_vm0 = vcmask 1046528   ;;  %vm512_vm1 = vcmask 1045504   ;;  %s1476_s0 = inlined_call_operand.vmem [shape: f32[2,64,128], index: 0, kind: input, shape index: {}]   ;;  %s1477_s1 = inlined_call_operand.vmem [shape: f32[18,128], index: 1, kind: input, shape index: {}]   ;;  %s1478_s2 = inlined_call_operand.vmem [shape: f32[1,128], index: 2, kind: input, shape index: {}]   ;;  %s1479_s3 = inlined_call_operand.vmem [shape: f32[62,128], index: 3, kind: output, shape index: {}]  }
   0x1   :  { %v16_v0 = vld [vmem:[%s1476_s0 + $0x10] sm:$0xff]  ;;  %v14_v1 = vld [vmem:[%s1476_s0] sm:$0xff]  ;;  %v17_v2 = vld [vmem:[%s1476_s0 + $0x18] sm:$0xff] }
   0x2   :  { %65 = vrot.lane.b32.xlu1 %v16_v0, %s713_s16  ;;  %61 = vrot.lane.b32.xlu0 %v14_v1, %s713_s16  ;;  %v15_v3 = vld [vmem:[%s1476_s0 + $0x8] sm:$0xff]  ;;  %v758_v5 = vld [vmem:[%s1476_s0 + $0x20] sm:$0xff] }
   0x3   :  { %v19_v4 = vld [vmem:[%s1476_s0 + $0x28] sm:$0xff]  ;;  %v766_v6 = vld [vmem:[%s1476_s0 + $0x38] sm:$0xff]  ;;  %v771_v7 = vld [vmem:[%s1476_s0 + $0x30] sm:$0xff] }
   0x4   :  { %v693_v8 = vld [vmem:[%s1476_s0 + $0x48] sm:$0xff]  ;;  %v794_v9 = vld [vmem:[%s1476_s0 + $0x40] sm:$0xff]  ;;  %v802_v10 = vld [vmem:[%s1476_s0 + $0x58] sm:$0xff] }
   0x5   :  { %v807_v11 = vld [vmem:[%s1476_s0 + $0x50] sm:$0xff]  ;;  %v816_v12 = vld [vmem:[%s1476_s0 + $0x68] sm:$0xff]  ;;  %v821_v13 = vld [vmem:[%s1476_s0 + $0x60] sm:$0xff] }
   0x6   :  { %67 = vrot.lane.b32.xlu1 %v17_v2, %s713_s16  ;;  %63 = vrot.lane.b32.xlu0 %v15_v3, %s713_s16  ;;  %v830_v14 = vld [vmem:[%s1476_s0 + $0x78] sm:$0xff]  ;;  %v835_v15 = vld [vmem:[%s1476_s0 + $0x70] sm:$0xff] }
   0x7   :  { %v683_v16 = vld [vmem:[%s1477_s1] ss:$0 sm:$0xff]  ;;  %v684_v17 = vld [vmem:[%s1477_s1 + $0x3] ss:$0 sm:$0xff]  ;;  %v685_v18 = vld [vmem:[%s1477_s1 + $0x6] ss:$0 sm:$0xff] }
   0x8   :  { %v865_v19 = vmul.f32 %v683_v16, %v16_v0  ;;  %v867_v20 = vmul.f32 %v684_v17, %v16_v0  ;;  %v869_v21 = vmul.f32 %v685_v18, %v16_v0  ;;  %v871_v22 = vmul.f32 %v683_v16, %v14_v1  ;;  %v700_v35 = vld [vmem:[%s1477_s1 + $0x9] ss:$0 sm:$0xff]  ;;  %v701_v36 = vld [vmem:[%s1477_s1 + $0xc] ss:$0 sm:$0xff]  ;;  %v702_v37 = vld [vmem:[%s1477_s1 + $0xf] ss:$0 sm:$0xff] }
   0x9   :  { %v873_v23 = vmul.f32 %v684_v17, %v14_v1  ;;  %v875_v24 = vmul.f32 %v685_v18, %v14_v1  ;;  %v877_v25 = vmul.f32 %v683_v16, %v17_v2  ;;  %v879_v26 = vmul.f32 %v684_v17, %v17_v2  ;;  %v934_v48 = vld [vmem:[%s1477_s1 + $0x1] ss:$0 sm:$0xff]  ;;  %v939_v49 = vld [vmem:[%s1477_s1 + $0x4] ss:$0 sm:$0xff] }
   0xa   :  { %71 = vrot.lane.b32.xlu1 %v19_v4, %s713_s16  ;;  %69 = vrot.lane.b32.xlu0 %v758_v5, %s713_s16  ;;  %v881_v27 = vmul.f32 %v685_v18, %v17_v2  ;;  %v883_v28 = vmul.f32 %v683_v16, %v15_v3  ;;  %v885_v29 = vmul.f32 %v684_v17, %v15_v3 }
   0xb   :  { %v887_v30 = vmul.f32 %v685_v18, %v15_v3  ;;  %v889_v31 = vmul.f32 %v683_v16, %v19_v4  ;;  %v891_v32 = vmul.f32 %v684_v17, %v19_v4  ;;  %v893_v33 = vmul.f32 %v685_v18, %v19_v4 }
   0xc   :  { %v896_v34 = vmul.f32 %v683_v16, %v758_v5  ;;  %v908_v40 = vmul.f32 %v684_v17, %v758_v5  ;;  %v911_v41 = vmul.f32 %v685_v18, %v758_v5  ;;  %v914_v42 = vmul.f32 %v683_v16, %v766_v6 }
   0xd   :  { %v917_v43 = vmul.f32 %v684_v17, %v766_v6  ;;  %v920_v44 = vmul.f32 %v685_v18, %v766_v6  ;;  %v923_v45 = vmul.f32 %v683_v16, %v771_v7  ;;  %v926_v46 = vmul.f32 %v684_v17, %v771_v7 }
   0xe   :  { %75 = vrot.lane.b32.xlu1 %v766_v6, %s713_s16  ;;  %73 = vrot.lane.b32.xlu0 %v771_v7, %s713_s16  ;;  %v929_v47 = vmul.f32 %v685_v18, %v771_v7  ;;  %v941_v50 = vmul.f32 %v700_v35, %v693_v8  ;;  %v943_v51 = vmul.f32 %v701_v36, %v693_v8 }
   0xf   :  { %v945_v52 = vmul.f32 %v702_v37, %v693_v8  ;;  %v948_v53 = vmul.f32 %v700_v35, %v794_v9  ;;  %v951_v54 = vmul.f32 %v701_v36, %v794_v9  ;;  %v954_v55 = vmul.f32 %v702_v37, %v794_v9 }
  0x10   :  { %v957_v56 = vmul.f32 %v700_v35, %v802_v10  ;;  %v960_v57 = vmul.f32 %v701_v36, %v802_v10  ;;  %v963_v60 = vmul.f32 %v702_v37, %v802_v10  ;;  %v966_v61 = vmul.f32 %v700_v35, %v807_v11 }
  0x11   :  { %v969_v62 = vmul.f32 %v701_v36, %v807_v11  ;;  %v972_v63 = vmul.f32 %v702_v37, %v807_v11 }
  0x12   :  { %142 = vrot.lane.b32.xlu1 %v15_v3, %s714_s29  ;;  %140 = vrot.lane.b32.xlu0 %v14_v1, %s714_s29  ;;  %v982_v3 = vmul.f32 %v700_v35, %v816_v12 }
  0x13   :  { %1480 = vst [vmem:[#allocation2_spill] sm:$0xff] %v969_v62  ;;  %1481 = vst [vmem:[#allocation3_spill] sm:$0xff] %v972_v63 }
  0x14   :  { %1482 = vst [vmem:[#allocation4_spill] sm:$0xff] %v982_v3 }
  0x16   :  { %146 = vrot.lane.b32.xlu1 %v17_v2, %s714_s29  ;;  %144 = vrot.lane.b32.xlu0 %v16_v0, %s714_s29  ;;  %v977_v0 = vld [vmem:[%s1477_s1 + $0x7] ss:$0 sm:$0xff] }
  0x1a   :  { %150 = vrot.lane.b32.xlu1 %v19_v4, %s714_s29  ;;  %148 = vrot.lane.b32.xlu0 %v758_v5, %s714_s29  ;;  %v985_v4 = vmul.f32 %v701_v36, %v816_v12  ;;  %v988_v5 = vmul.f32 %v702_v37, %v816_v12 }
  0x1c   :  { %1483 = vst [vmem:[#allocation5_spill] sm:$0xff] %v985_v4  ;;  %1484 = vst [vmem:[#allocation6_spill] sm:$0xff] %v988_v5 }
  0x1e   :  { %154 = vrot.lane.b32.xlu1 %v766_v6, %s714_s29  ;;  %152 = vrot.lane.b32.xlu0 %v771_v7, %s714_s29  ;;  %v991_v6 = vmul.f32 %v700_v35, %v821_v13  ;;  %v994_v7 = vmul.f32 %v701_v36, %v821_v13 }
  0x20   :  { %1485 = vst [vmem:[#allocation7_spill] sm:$0xff] %v991_v6  ;;  %1486 = vst [vmem:[#allocation8_spill] sm:$0xff] %v994_v7 }
  0x22   :  { %293 = vrot.lane.b32.xlu1 %v693_v8, %s713_s16  ;;  %291 = vrot.lane.b32.xlu0 %v794_v9, %s713_s16 }
  0x26   :  { %297 = vrot.lane.b32.xlu1 %v802_v10, %s713_s16  ;;  %295 = vrot.lane.b32.xlu0 %v807_v11, %s713_s16 }
  0x2a   :  { %301 = vrot.lane.b32.xlu1 %v816_v12, %s713_s16  ;;  %299 = vrot.lane.b32.xlu0 %v821_v13, %s713_s16 }
  0x2e   :  { %305 = vrot.lane.b32.xlu1 %v830_v14, %s713_s16  ;;  %303 = vrot.lane.b32.xlu0 %v835_v15, %s713_s16 }
  0x32   :  { %372 = vrot.lane.b32.xlu1 %v693_v8, %s714_s29  ;;  %370 = vrot.lane.b32.xlu0 %v794_v9, %s714_s29  ;;  %v997_v8 = vmul.f32 %v702_v37, %v821_v13  ;;  %v1000_v9 = vmul.f32 %v700_v35, %v830_v14 }
  0x34   :  { %1487 = vst [vmem:[#allocation9_spill] sm:$0xff] %v997_v8  ;;  %1488 = vst [vmem:[#allocation10_spill] sm:$0xff] %v1000_v9  ;;  %v1017_v9 = vmul.f32 %v702_v37, %v835_v15 }
  0x36   :  { %376 = vrot.lane.b32.xlu1 %v802_v10, %s714_s29  ;;  %374 = vrot.lane.b32.xlu0 %v807_v11, %s714_s29  ;;  %v1003_v10 = vmul.f32 %v701_v36, %v830_v14  ;;  %v1006_v11 = vmul.f32 %v702_v37, %v830_v14  ;;  %1493 = vst [vmem:[#allocation15_spill] sm:$0xff] %v1017_v9 }
  0x38   :  { %1489 = vst [vmem:[#allocation11_spill] sm:$0xff] %v1003_v10  ;;  %1490 = vst [vmem:[#allocation12_spill] sm:$0xff] %v1006_v11 }
  0x3a   :  { %380 = vrot.lane.b32.xlu1 %v816_v12, %s714_s29  ;;  %378 = vrot.lane.b32.xlu0 %v821_v13, %s714_s29  ;;  %v1009_v12 = vmul.f32 %v700_v35, %v835_v15  ;;  %v1014_v13 = vmul.f32 %v701_v36, %v835_v15 }
  0x3c   :  { %1491 = vst [vmem:[#allocation13_spill] sm:$0xff] %v1009_v12  ;;  %1492 = vst [vmem:[#allocation14_spill] sm:$0xff] %v1014_v13 }
  0x3e   :  { %384 = vrot.lane.b32.xlu1 %v830_v14, %s714_s29  ;;  %382 = vrot.lane.b32.xlu0 %v835_v15, %s714_s29 }
  0x74   :  { %v66_v38 = vpop.permute.xlu1 %65  ;;  %v62_v39 = vpop.permute.xlu0 %61 }
  0x75   :  { %v84_v1 = vmul.f32 %v934_v48, %v66_v38  ;;  %v105_v2 = vmul.f32 %v939_v49, %v66_v38  ;;  %v126_v16 = vmul.f32 %v977_v0, %v66_v38  ;;  %v82_v17 = vmul.f32 %v934_v48, %v62_v39 }
  0x76   :  { %v103_v35 = vmul.f32 %v939_v49, %v62_v39  ;;  %v124_v38 = vmul.f32 %v977_v0, %v62_v39 }
  0x77   :  { %v1020_v10 = vadd.f32 %v84_v1, %v865_v19  ;;  %v1023_v14 = vadd.f32 %v105_v2, %v867_v20  ;;  %v1040_v6 = vadd.f32 %v126_v16, %v869_v21  ;;  %v90_v5 = vadd.f32 %v82_v17, %v871_v22  ;;  %v1057_v21 = vld [vmem:[%s1477_s1 + $0x5] ss:$0 sm:$0xff]  ;;  %v1062_v22 = vld [vmem:[%s1477_s1 + $0x8] ss:$0 sm:$0xff] }
  0x78   :  { %v68_v58 = vpop.permute.xlu1 %67  ;;  %v64_v59 = vpop.permute.xlu0 %63  ;;  %v132_v4 = vadd.f32 %v124_v38, %v875_v24 }
  0x79   :  { %v85_v12 = vmul.f32 %v934_v48, %v68_v58  ;;  %v106_v11 = vmul.f32 %v939_v49, %v68_v58  ;;  %v127_v36 = vmul.f32 %v977_v0, %v68_v58  ;;  %v83_v13 = vmul.f32 %v934_v48, %v64_v59 }
  0x7a   :  { %v104_v15 = vmul.f32 %v939_v49, %v64_v59  ;;  %v125_v19 = vmul.f32 %v977_v0, %v64_v59  ;;  %v111_v59 = vadd.f32 %v103_v35, %v873_v23 }
  0x7b   :  { %v93_v3 = vadd.f32 %v85_v12, %v877_v25  ;;  %v135_v63 = vadd.f32 %v127_v36, %v881_v27  ;;  %v91_v62 = vadd.f32 %v83_v13, %v883_v28 }
  0x7c   :  { %v72_v18 = vpop.permute.xlu1 %71  ;;  %v70_v7 = vpop.permute.xlu0 %69  ;;  %v112_v23 = vadd.f32 %v104_v15, %v885_v29  ;;  %v133_v24 = vadd.f32 %v125_v19, %v887_v30 }
  0x7d   :  { %v87_v37 = vmul.f32 %v934_v48, %v72_v18  ;;  %v108_v20 = vmul.f32 %v939_v49, %v72_v18  ;;  %v129_v1 = vmul.f32 %v977_v0, %v72_v18  ;;  %v86_v39 = vmul.f32 %v934_v48, %v70_v7 }
  0x7e   :  { %v107_v2 = vmul.f32 %v939_v49, %v70_v7  ;;  %v128_v9 = vmul.f32 %v977_v0, %v70_v7  ;;  %v114_v18 = vadd.f32 %v106_v11, %v879_v26  ;;  %v1052_v7 = vld [vmem:[%s1477_s1 + $0x2] ss:$0 sm:$0xff] }
  0x7f   :  { %v1067_v25 = vadd.f32 %v87_v37, %v889_v31  ;;  %v1070_v26 = vadd.f32 %v108_v20, %v891_v32  ;;  %v1073_v27 = vadd.f32 %v129_v1, %v893_v33  ;;  %v1076_v28 = vadd.f32 %v86_v39, %v896_v34 }
  0x80   :  { %v76_v8 = vpop.permute.xlu1 %75  ;;  %v74_v58 = vpop.permute.xlu0 %73  ;;  %v1079_v11 = vadd.f32 %v107_v2, %v908_v40  ;;  %v1082_v12 = vadd.f32 %v128_v9, %v911_v41 }
  0x81   :  { %v89_v17 = vmul.f32 %v934_v48, %v76_v8  ;;  %v110_v34 = vmul.f32 %v939_v49, %v76_v8  ;;  %v131_v41 = vmul.f32 %v977_v0, %v76_v8  ;;  %v88_v9 = vmul.f32 %v934_v48, %v74_v58 }
  0x82   :  { %v109_v36 = vmul.f32 %v939_v49, %v74_v58  ;;  %v130_v15 = vmul.f32 %v977_v0, %v74_v58 }
  0x83   :  { %v97_v0 = vadd.f32 %v89_v17, %v914_v42  ;;  %v96_v42 = vadd.f32 %v88_v9, %v923_v45 }
  0x84   :  { %v143_v29 = vpop.permute.xlu1 %142  ;;  %v141_v30 = vpop.permute.xlu0 %140 }
  0x85   :  { %v162_v31 = vmul.f32 %v1052_v7, %v143_v29  ;;  %v183_v16 = vmul.f32 %v1057_v21, %v143_v29  ;;  %v204_v32 = vmul.f32 %v1062_v22, %v143_v29  ;;  %v161_v33 = vmul.f32 %v1052_v7, %v141_v30 }
  0x86   :  { %v182_v40 = vmul.f32 %v1057_v21, %v141_v30  ;;  %v203_v13 = vmul.f32 %v1062_v22, %v141_v30 }
  0x87   :  { %v170_v35 = vadd.f32 %v162_v31, %v91_v62  ;;  %v191_v38 = vadd.f32 %v183_v16, %v112_v23  ;;  %v212_v19 = vadd.f32 %v204_v32, %v133_v24  ;;  %v169_v37 = vadd.f32 %v161_v33, %v90_v5 }
  0x88   :  { %v147_v20 = vpop.permute.xlu1 %146  ;;  %v145_v1 = vpop.permute.xlu0 %144  ;;  %v190_v30 = vadd.f32 %v182_v40, %v111_v59  ;;  %v211_v48 = vadd.f32 %v203_v13, %v132_v4  ;;  %v118_v5 = vadd.f32 %v110_v34, %v917_v43 }
  0x89   :  { %v164_v39 = vmul.f32 %v1052_v7, %v147_v20  ;;  %v185_v2 = vmul.f32 %v1057_v21, %v147_v20  ;;  %v206_v29 = vmul.f32 %v1062_v22, %v147_v20  ;;  %v163_v8 = vmul.f32 %v1052_v7, %v145_v1 }
  0x8a   :  { %v1101_v62 = vadd.f32 %v941_v50, %v170_v35  ;;  %v1104_v49 = vadd.f32 %v943_v51, %v191_v38  ;;  %v184_v58 = vmul.f32 %v1057_v21, %v145_v1  ;;  %v205_v23 = vmul.f32 %v1062_v22, %v145_v1 }
  0x8b   :  { %v172_v24 = vadd.f32 %v164_v39, %v93_v3  ;;  %v193_v31 = vadd.f32 %v185_v2, %v114_v18  ;;  %v1111_v4 = vadd.f32 %v945_v52, %v212_v19  ;;  %v1114_v50 = vadd.f32 %v948_v53, %v169_v37 }
  0x8c   :  { %v151_v16 = vpop.permute.xlu1 %150  ;;  %v149_v32 = vpop.permute.xlu0 %148  ;;  %v139_v51 = vadd.f32 %v131_v41, %v920_v44  ;;  %v214_v59 = vadd.f32 %v206_v29, %v135_v63  ;;  %v171_v43 = vadd.f32 %v163_v8, %v1020_v10  ;;  %v262_v18 = vadd.f32 %v951_v54, %v190_v30  ;;  %v1496_v8 = vld [vmem:[#allocation4_spill] sm:$0xff] }
  0x8d   :  { %v166_v33 = vmul.f32 %v1052_v7, %v151_v16  ;;  %v187_v3 = vmul.f32 %v1057_v21, %v151_v16  ;;  %v283_v17 = vadd.f32 %v954_v55, %v211_v48  ;;  %v208_v52 = vmul.f32 %v1062_v22, %v151_v16  ;;  %v1497_v48 = vld [vmem:[#allocation5_spill] sm:$0xff] }
  0x8e   :  { %v165_v53 = vmul.f32 %v1052_v7, %v149_v32  ;;  %v186_v34 = vmul.f32 %v1057_v21, %v149_v32  ;;  %v207_v44 = vmul.f32 %v1062_v22, %v149_v32  ;;  %v192_v45 = vadd.f32 %v184_v58, %v1023_v14  ;;  %v1498_v32 = vld [vmem:[#allocation6_spill] sm:$0xff] }
  0x8f   :  { %v213_v63 = vadd.f32 %v205_v23, %v1040_v6  ;;  %v244_v13 = vadd.f32 %v957_v56, %v172_v24  ;;  %v265_v54 = vadd.f32 %v960_v57, %v193_v31  ;;  %v117_v55 = vadd.f32 %v109_v36, %v926_v46 }
  0x90   :  { %v155_v10 = vpop.permute.xlu1 %154  ;;  %v153_v40 = vpop.permute.xlu0 %152  ;;  %v138_v41 = vadd.f32 %v130_v15, %v929_v47  ;;  %v174_v38 = vadd.f32 %v166_v33, %v1067_v25  ;;  %v195_v14 = vadd.f32 %v187_v3, %v1070_v26  ;;  %v1138_v6 = vadd.f32 %v963_v60, %v214_v59  ;;  %v1150_v25 = vld [vmem:[%s1477_s1 + $0xa] ss:$0 sm:$0xff]  ;;  %v1155_v60 = vld [vmem:[%s1477_s1 + $0xd] ss:$0 sm:$0xff] }
  0x91   :  { %v168_v9 = vmul.f32 %v1052_v7, %v155_v10  ;;  %v189_v35 = vmul.f32 %v1057_v21, %v155_v10  ;;  %v1141_v19 = vadd.f32 %v966_v61, %v171_v43  ;;  %v216_v56 = vadd.f32 %v208_v52, %v1073_v27  ;;  %v1162_v27 = vld [vmem:[%s1477_s1 + $0x10] ss:$0 sm:$0xff]  ;;  %v1495_v15 = vld [vmem:[#allocation3_spill] sm:$0xff] }
  0x92   :  { %v173_v46 = vadd.f32 %v165_v53, %v1076_v28  ;;  %v194_v47 = vadd.f32 %v186_v34, %v1079_v11  ;;  %v215_v57 = vadd.f32 %v207_v44, %v1082_v12  ;;  %v210_v61 = vmul.f32 %v1062_v22, %v155_v10  ;;  %v1494_v12 = vld [vmem:[#allocation2_spill] sm:$0xff]  ;;  %v1499_v43 = vld [vmem:[#allocation7_spill] sm:$0xff] }
  0x93   :  { %v167_v26 = vmul.f32 %v1052_v7, %v153_v40  ;;  %v264_v36 = vadd.f32 %v1494_v12, %v192_v45  ;;  %v285_v37 = vadd.f32 %v1495_v15, %v213_v63  ;;  %v176_v20 = vadd.f32 %v168_v9, %v97_v0  ;;  %v1501_v63 = vld [vmem:[#allocation9_spill] sm:$0xff] }
  0x94   :  { %v294_v28 = vpop.permute.xlu1 %293  ;;  %v292_v11 = vpop.permute.xlu0 %291  ;;  %v197_v1 = vadd.f32 %v189_v35, %v118_v5  ;;  %v188_v39 = vmul.f32 %v1057_v21, %v153_v40  ;;  %v209_v2 = vmul.f32 %v1062_v22, %v153_v40  ;;  %v246_v30 = vadd.f32 %v1496_v8, %v174_v38  ;;  %v1507_v8 = vld [vmem:[#allocation15_spill] sm:$0xff] }
  0x95   :  { %v313_v29 = vmul.f32 %v1150_v25, %v294_v28  ;;  %v334_v7 = vmul.f32 %v1155_v60, %v294_v28  ;;  %v267_v58 = vadd.f32 %v1497_v48, %v195_v14  ;;  %v355_v23 = vmul.f32 %v1162_v27, %v294_v28  ;;  %v1502_v14 = vld [vmem:[#allocation10_spill] sm:$0xff] }
  0x96   :  { %v312_v24 = vmul.f32 %v1150_v25, %v292_v11  ;;  %v333_v31 = vmul.f32 %v1155_v60, %v292_v11  ;;  %v354_v0 = vmul.f32 %v1162_v27, %v292_v11  ;;  %v218_v5 = vadd.f32 %v210_v61, %v139_v51  ;;  %v1500_v51 = vld [vmem:[#allocation8_spill] sm:$0xff]  ;;  %v1505_v11 = vld [vmem:[#allocation13_spill] sm:$0xff] }
  0x97   :  { %v175_v21 = vadd.f32 %v167_v26, %v96_v42  ;;  %v288_v59 = vadd.f32 %v1498_v32, %v216_v56  ;;  %v245_v33 = vadd.f32 %v1499_v43, %v173_v46  ;;  %v196_v3 = vadd.f32 %v188_v39, %v117_v55  ;;  %v1503_v46 = vld [vmem:[#allocation11_spill] sm:$0xff]  ;;  %v1504_v26 = vld [vmem:[#allocation12_spill] sm:$0xff] }
  0x98   :  { %v298_v16 = vpop.permute.xlu1 %297  ;;  %v296_v22 = vpop.permute.xlu0 %295  ;;  %v217_v52 = vadd.f32 %v209_v2, %v138_v41  ;;  %v1181_v44 = vadd.f32 %v313_v29, %v1101_v62  ;;  %v1184_v45 = vadd.f32 %v334_v7, %v1104_v49  ;;  %v266_v42 = vadd.f32 %v1500_v51, %v194_v47  ;;  %v1506_v29 = vld [vmem:[#allocation14_spill] sm:$0xff] }
  0x99   :  { %v315_v53 = vmul.f32 %v1150_v25, %v298_v16  ;;  %v336_v34 = vmul.f32 %v1155_v60, %v298_v16  ;;  %v287_v10 = vadd.f32 %v1501_v63, %v215_v57  ;;  %v1189_v40 = vadd.f32 %v355_v23, %v1111_v4 }
  0x9a   :  { %v1192_v55 = vadd.f32 %v312_v24, %v1114_v50  ;;  %v1194_v41 = vadd.f32 %v333_v31, %v262_v18  ;;  %v1196_v9 = vadd.f32 %v354_v0, %v283_v17  ;;  %v357_v62 = vmul.f32 %v1162_v27, %v298_v16 }
  0x9b   :  { %v314_v35 = vmul.f32 %v1150_v25, %v296_v22  ;;  %v248_v56 = vadd.f32 %v1502_v14, %v176_v20  ;;  %v269_v47 = vadd.f32 %v1503_v46, %v197_v1  ;;  %v1202_v57 = vadd.f32 %v315_v53, %v244_v13 }
  0x9c   :  { %v302_v49 = vpop.permute.xlu1 %301  ;;  %v300_v38 = vpop.permute.xlu0 %299  ;;  %v1204_v4 = vadd.f32 %v336_v34, %v265_v54  ;;  %v335_v50 = vmul.f32 %v1155_v60, %v296_v22  ;;  %v356_v18 = vmul.f32 %v1162_v27, %v296_v22  ;;  %v290_v28 = vadd.f32 %v1504_v26, %v218_v5 }
  0x9d   :  { %v317_v17 = vmul.f32 %v1150_v25, %v302_v49  ;;  %v338_v61 = vmul.f32 %v1155_v60, %v302_v49  ;;  %v247_v12 = vadd.f32 %v1505_v11, %v175_v21  ;;  %v359_v15 = vmul.f32 %v1162_v27, %v302_v49 }
  0x9e   :  { %v316_v20 = vmul.f32 %v1150_v25, %v300_v38  ;;  %v337_v13 = vmul.f32 %v1155_v60, %v300_v38  ;;  %v358_v54 = vmul.f32 %v1162_v27, %v300_v38  ;;  %v1217_v1 = vadd.f32 %v357_v62, %v1138_v6 }
  0x9f   :  { %v1220_v39 = vadd.f32 %v314_v35, %v1141_v19  ;;  %v268_v7 = vadd.f32 %v1506_v29, %v196_v3  ;;  %v289_v48 = vadd.f32 %v1507_v8, %v217_v52  ;;  %v1224_v24 = vadd.f32 %v335_v50, %v264_v36  ;;  %v1239_v36 = vld [vmem:[%s1477_s1 + $0xb] ss:$0 sm:$0xff] }
  0xa0   :  { %v306_v2 = vpop.permute.xlu1 %305  ;;  %v304_v23 = vpop.permute.xlu0 %303  ;;  %v1226_v31 = vadd.f32 %v356_v18, %v285_v37  ;;  %v1230_v6 = vadd.f32 %v317_v17, %v246_v30  ;;  %v1232_v19 = vadd.f32 %v338_v61, %v267_v58  ;;  %v1244_v37 = vld [vmem:[%s1477_s1 + $0xe] ss:$0 sm:$0xff]  ;;  %v1249_v30 = vld [vmem:[%s1477_s1 + $0x11] ss:$0 sm:$0xff]  ;;  %v1251_v58 = vadd.f32 %v359_v15, %v288_v59 }
  0xa1   :  { %v319_v0 = vmul.f32 %v1150_v25, %v306_v2  ;;  %v340_v5 = vmul.f32 %v1155_v60, %v306_v2  ;;  %v361_v21 = vmul.f32 %v1162_v27, %v306_v2  ;;  %v318_v16 = vmul.f32 %v1150_v25, %v304_v23 }
  0xa2   :  { %v1253_v22 = vadd.f32 %v316_v20, %v245_v33  ;;  %v1255_v25 = vadd.f32 %v337_v13, %v266_v42  ;;  %v1257_v32 = vadd.f32 %v358_v54, %v287_v10  ;;  %v339_v52 = vmul.f32 %v1155_v60, %v304_v23  ;;  %v1276_v60 = vld [vmem:[%s1478_s2] ss:$0 sm:$0xff]  ;;  %s715_s2 = smov 1  }
  0xa3   :  { %v1259_v43 = vadd.f32 %v319_v0, %v248_v56  ;;  %v1261_v3 = vadd.f32 %v340_v5, %v269_v47  ;;  %v360_v53 = vmul.f32 %v1162_v27, %v304_v23  ;;  %v1269_v10 = vadd.f32 %v361_v21, %v290_v28 }
  0xa4   :  { %v373_v34 = vpop.permute.xlu1 %372  ;;  %v371_v51 = vpop.permute.xlu0 %370  ;;  %v1271_v62 = vadd.f32 %v318_v16, %v247_v12  ;;  %v1288_v46 = vadd.f32 %v339_v52, %v268_v7 }
  0xa5   :  { %v392_v63 = vmul.f32 %v1239_v36, %v373_v34  ;;  %v413_v59 = vmul.f32 %v1244_v37, %v373_v34  ;;  %v434_v33 = vmul.f32 %v1249_v30, %v373_v34  ;;  %v391_v42 = vmul.f32 %v1239_v36, %v371_v51 }
  0xa6   :  { %v412_v27 = vmul.f32 %v1244_v37, %v371_v51  ;;  %v433_v35 = vmul.f32 %v1249_v30, %v371_v51  ;;  %v1290_v47 = vadd.f32 %v360_v53, %v289_v48 }
  0xa7   :  { %v400_v49 = vadd.f32 %v392_v63, %v1181_v44  ;;  %v1282_v38 = vadd.f32 %v413_v59, %v1184_v45  ;;  %v1285_v14 = vadd.f32 %v434_v33, %v1189_v40  ;;  %v399_v56 = vadd.f32 %v391_v42, %v1192_v55 }
  0xa8   :  { %v420_v50 = vadd.f32 %v412_v27, %v1194_v41  ;;  %v441_v18 = vadd.f32 %v433_v35, %v1196_v9  ;;  %v377_v17 = vpop.permute.xlu1 %376  ;;  %v375_v61 = vpop.permute.xlu0 %374 }
  0xa9   :  { %v1295_v44 = vadd.f32 %v1276_v60, %v400_v49  ;;  %v474_v45 = vrot.slane %v1282_v38, 1  ;;  %v514_v40 = vrot.slane %v1285_v14, 2  ;;  %v456_v26 = vadd.f32 %v1276_v60, %v399_v56 }
  0xaa   :  { %v473_v55 = vrot.slane %v420_v50, 1  ;;  %v513_v28 = vrot.slane %v441_v18, 2  ;;  %v394_v11 = vmul.f32 %v1239_v36, %v377_v17  ;;  %v415_v12 = vmul.f32 %v1244_v37, %v377_v17 }
  0xab   :  { %v436_v41 = vmul.f32 %v1249_v30, %v377_v17  ;;  %v393_v9 = vmul.f32 %v1239_v36, %v375_v61  ;;  %v414_v15 = vmul.f32 %v1244_v37, %v375_v61  ;;  %v435_v20 = vmul.f32 %v1249_v30, %v375_v61 }
  0xac   :  { %v402_v13 = vadd.f32 %v394_v11, %v1202_v57  ;;  %v1308_v54 = vadd.f32 %v415_v12, %v1204_v4  ;;  %v381_v2 = vpop.permute.xlu1 %380  ;;  %v379_v29 = vpop.permute.xlu0 %378  ;;  %v475_v7 = vsel %vm472_vm0, %v473_v55, %v474_v45  ;;  %v515_v8 = vsel %vm512_vm1, %v513_v28, %v514_v40 }
  0xad   :  { %v1317_v48 = vadd.f32 %v436_v41, %v1217_v1  ;;  %v401_v23 = vadd.f32 %v393_v9, %v1220_v39  ;;  %v422_v57 = vadd.f32 %v414_v15, %v1224_v24  ;;  %v443_v4 = vadd.f32 %v435_v20, %v1226_v31 }
  0xae   :  { %v1323_v0 = vadd.f32 %v1276_v60, %v402_v13  ;;  %v478_v5 = vrot.slane %v1308_v54, 1  ;;  %v396_v21 = vmul.f32 %v1239_v36, %v381_v2  ;;  %v417_v16 = vmul.f32 %v1244_v37, %v381_v2 }
  0xaf   :  { %v518_v52 = vrot.slane %v1317_v48, 2  ;;  %v458_v1 = vadd.f32 %v1276_v60, %v401_v23  ;;  %v476_v53 = vrot.slane %v422_v57, 1  ;;  %v516_v34 = vrot.slane %v443_v4, 2 }
  0xb0   :  { %v404_v39 = vadd.f32 %v396_v21, %v1230_v6  ;;  %v425_v24 = vadd.f32 %v417_v16, %v1232_v19  ;;  %v438_v31 = vmul.f32 %v1249_v30, %v381_v2  ;;  %v395_v51 = vmul.f32 %v1239_v36, %v379_v29  ;;  %v385_v63 = vpop.permute.xlu1 %384  ;;  %v383_v35 = vpop.permute.xlu0 %382 }
  0xb1   :  { %v416_v59 = vmul.f32 %v1244_v37, %v379_v29  ;;  %v437_v33 = vmul.f32 %v1249_v30, %v379_v29  ;;  %v398_v42 = vmul.f32 %v1239_v36, %v385_v63  ;;  %v419_v27 = vmul.f32 %v1244_v37, %v385_v63 }
  0xb2   :  { %v446_v49 = vadd.f32 %v438_v31, %v1251_v58  ;;  %v461_v6 = vadd.f32 %v1276_v60, %v404_v39  ;;  %v482_v56 = vrot.slane %v425_v24, 1  ;;  %v403_v19 = vadd.f32 %v395_v51, %v1253_v22 }
  0xb3   :  { %v424_v50 = vadd.f32 %v416_v59, %v1255_v25  ;;  %v445_v18 = vadd.f32 %v437_v33, %v1257_v32  ;;  %v406_v17 = vadd.f32 %v398_v42, %v1259_v43  ;;  %v427_v61 = vadd.f32 %v419_v27, %v1261_v3 }
  0xb4   :  { %v522_v55 = vrot.slane %v446_v49, 2  ;;  %v460_v28 = vadd.f32 %v1276_v60, %v403_v19  ;;  %v440_v11 = vmul.f32 %v1249_v30, %v385_v63  ;;  %v397_v58 = vmul.f32 %v1239_v36, %v383_v35 }
  0xb5   :  { %v480_v12 = vrot.slane %v424_v50, 1  ;;  %v520_v41 = vrot.slane %v445_v18, 2  ;;  %v463_v9 = vadd.f32 %v1276_v60, %v406_v17  ;;  %v486_v22 = vrot.slane %v427_v61, 1 }
  0xb6   :  { %v448_v25 = vadd.f32 %v440_v11, %v1269_v10  ;;  %v405_v32 = vadd.f32 %v397_v58, %v1271_v62  ;;  %v418_v43 = vmul.f32 %v1244_v37, %v383_v35  ;;  %v439_v3 = vmul.f32 %v1249_v30, %v383_v35 }
  0xb7   :  { %v496_v15 = vadd.f32 %v475_v7, %v456_v26  ;;  %v479_v20 = vsel %vm472_vm0, %v476_v53, %v478_v5  ;;  %v519_v36 = vsel %vm512_vm1, %v516_v34, %v518_v52  ;;  %v483_v13 = vsel %vm472_vm0, %v480_v12, %v482_v56 }
  0xb8   :  { %v426_v54 = vadd.f32 %v418_v43, %v1288_v46  ;;  %v447_v2 = vadd.f32 %v439_v3, %v1290_v47  ;;  %v462_v10 = vadd.f32 %v1276_v60, %v405_v32  ;;  %v498_v62 = vadd.f32 %v479_v20, %v458_v1 }
  0xb9   :  { %v536_v29 = vadd.f32 %v515_v8, %v496_v15  ;;  %v500_v37 = vadd.f32 %v483_v13, %v460_v28  ;;  %v523_v30 = vsel %vm512_vm1, %v520_v41, %v522_v55  ;;  %v503_v26 = vadd.f32 %v486_v22, %v463_v9 }
  0xba   :  { %v484_v7 = vrot.slane %v426_v54, 1  ;;  %v524_v23 = vrot.slane %v447_v2, 2  ;;  %v538_v57 = vadd.f32 %v519_v36, %v498_v62  ;;  %v526_v4 = vrot.slane %v448_v25, 2 }
  0xbb   :  { %544 = vrot.lane.b32.xlu0 %v536_v29, %s715_s2  ;;  %v540_v21 = vadd.f32 %v523_v30, %v500_v37  ;;  %v477_v46 = vsel %vm472_vm0, %v474_v45, %v476_v53  ;;  %v517_v60 = vsel %vm512_vm1, %v514_v40, %v516_v34  ;;  %v481_v47 = vsel %vm472_vm0, %v478_v5, %v480_v12 }
  0xbc   :  { %v1369_v8 = vadd.f32 %v526_v4, %v503_v26  ;;  %v487_v16 = vsel %vm472_vm0, %v484_v7, %v486_v22  ;;  %v527_v1 = vsel %vm512_vm1, %v524_v23, %v526_v4  ;;  %v497_v39 = vadd.f32 %v477_v46, %v1295_v44 }
  0xbd   :  { %v502_v24 = vadd.f32 %v487_v16, %v462_v10  ;;  %v499_v31 = vadd.f32 %v481_v47, %v1323_v0  ;;  %v521_v38 = vsel %vm512_vm1, %v518_v52, %v520_v41  ;;  %v485_v14 = vsel %vm472_vm0, %v482_v56, %v484_v7 }
  0xbe   :  { %558 = vrot.lane.b32.xlu1 %v1369_v8, %s715_s2  ;;  %v537_v45 = vadd.f32 %v517_v60, %v497_v39  ;;  %v501_v40 = vadd.f32 %v485_v14, %v461_v6  ;;  %v525_v5 = vsel %vm512_vm1, %v522_v55, %v524_v23 }
  0xbf   :  { %548 = vrot.lane.b32.xlu0 %v538_v57, %s715_s2  ;;  %v542_v53 = vadd.f32 %v527_v1, %v502_v24  ;;  %v539_v34 = vadd.f32 %v521_v38, %v499_v31 }
  0xc0   :  { %v541_v51 = vadd.f32 %v525_v5, %v501_v40 }
  0xc2   :  { %546 = vrot.lane.b32.xlu1 %v537_v45, %s715_s2 }
  0xc3   :  { %552 = vrot.lane.b32.xlu0 %v540_v21, %s715_s2 }
  0xc6   :  { %550 = vrot.lane.b32.xlu1 %v539_v34, %s715_s2 }
  0xc7   :  { %556 = vrot.lane.b32.xlu0 %v542_v53, %s715_s2 }
  0xca   :  { %554 = vrot.lane.b32.xlu1 %v541_v51, %s715_s2 }
  0xcb   :  { %568 = vrot.lane.b32.xlu0 %v536_v29, %s713_s16 }
  0xce   :  { %570 = vrot.lane.b32.xlu1 %v537_v45, %s713_s16 }
  0xcf   :  { %572 = vrot.lane.b32.xlu0 %v538_v57, %s713_s16 }
  0xd2   :  { %574 = vrot.lane.b32.xlu1 %v539_v34, %s713_s16 }
  0xd3   :  { %576 = vrot.lane.b32.xlu0 %v540_v21, %s713_s16 }
  0xd6   :  { %578 = vrot.lane.b32.xlu1 %v541_v51, %s713_s16 }
  0xd7   :  { %580 = vrot.lane.b32.xlu0 %v542_v53, %s713_s16 }
  0xda   :  { %582 = vrot.lane.b32.xlu1 %v1369_v8, %s713_s16 }
 0x12d   :  { %v545_v44 = vpop.permute.xlu0 %544 }
 0x12e   :  { %v560_v27 = vadd.f32 %v545_v44, %v536_v29 }
 0x130   :  { %v559_v48 = vpop.permute.xlu1 %558 }
 0x131   :  { %v549_v0 = vpop.permute.xlu0 %548  ;;  %v567_v26 = vadd.f32 %v559_v48, %v1369_v8 }
 0x132   :  { %v562_v56 = vadd.f32 %v549_v0, %v538_v57 }
 0x134   :  { %v547_v52 = vpop.permute.xlu1 %546 }
 0x135   :  { %v553_v63 = vpop.permute.xlu0 %552  ;;  %v561_v49 = vadd.f32 %v547_v52, %v537_v45 }
 0x136   :  { %v564_v11 = vadd.f32 %v553_v63, %v540_v21 }
 0x138   :  { %v551_v59 = vpop.permute.xlu1 %550 }
 0x139   :  { %v557_v33 = vpop.permute.xlu0 %556  ;;  %v563_v55 = vadd.f32 %v551_v59, %v539_v34 }
 0x13a   :  { %v566_v36 = vadd.f32 %v557_v33, %v542_v53 }
 0x13c   :  { %v555_v42 = vpop.permute.xlu1 %554 }
 0x13d   :  { %v569_v35 = vpop.permute.xlu0 %568  ;;  %v565_v3 = vadd.f32 %v555_v42, %v541_v51 }
 0x13e   :  { %v584_v6 = vadd.f32 %v569_v35, %v560_v27 }
 0x140   :  { %v571_v19 = vpop.permute.xlu1 %570  ;;  %v616_v61 = vrot.slane %v584_v6, 1 }
 0x141   :  { %v573_v50 = vpop.permute.xlu0 %572  ;;  %v585_v18 = vadd.f32 %v571_v19, %v561_v49 }
 0x142   :  { %v586_v17 = vadd.f32 %v573_v50, %v562_v56 }
 0x143   :  { %v617_v28 = vrot.slane %v585_v18, 1 }
 0x144   :  { %v619_v58 = vrot.slane %v586_v17, 1  ;;  %v575_v12 = vpop.permute.xlu1 %574 }
 0x145   :  { %v577_v41 = vpop.permute.xlu0 %576  ;;  %v618_v9 = vsel %vm472_vm0, %v616_v61, %v617_v28  ;;  %v587_v22 = vadd.f32 %v575_v12, %v563_v55 }
 0x146   :  { %v588_v25 = vadd.f32 %v577_v41, %v564_v11  ;;  %v620_v32 = vsel %vm472_vm0, %v617_v28, %v619_v58  ;;  %v639_v43 = vadd.f32 %v618_v9, %v584_v6 }
 0x147   :  { %v640_v15 = vadd.f32 %v620_v32, %v585_v18  ;;  %v621_v20 = vrot.slane %v587_v22, 1 }
 0x148   :  { %v623_v13 = vrot.slane %v588_v25, 1  ;;  %647 = vst [vmem:[%s1479_s3] sm:$0xff] %v639_v43  ;;  %v579_v54 = vpop.permute.xlu1 %578 }
 0x149   :  { %648 = vst [vmem:[%s1479_s3 + $0x8] sm:$0xff] %v640_v15  ;;  %v581_v2 = vpop.permute.xlu0 %580  ;;  %v622_v10 = vsel %vm472_vm0, %v619_v58, %v621_v20  ;;  %v589_v62 = vadd.f32 %v579_v54, %v565_v3 }
 0x14a   :  { %v590_v29 = vadd.f32 %v581_v2, %v566_v36  ;;  %v624_v37 = vsel %vm472_vm0, %v621_v20, %v623_v13  ;;  %v641_v30 = vadd.f32 %v622_v10, %v586_v17 }
 0x14b   :  { %v642_v7 = vadd.f32 %v624_v37, %v587_v22  ;;  %v625_v23 = vrot.slane %v589_v62, 1 }
 0x14c   :  { %v627_v57 = vrot.slane %v590_v29, 1  ;;  %649 = vst [vmem:[%s1479_s3 + $0x10] sm:$0xff] %v641_v30  ;;  %v583_v4 = vpop.permute.xlu1 %582 }
 0x14d   :  { %650 = vst [vmem:[%s1479_s3 + $0x18] sm:$0xff] %v642_v7  ;;  %v626_v21 = vsel %vm472_vm0, %v623_v13, %v625_v23  ;;  %v591_v46 = vadd.f32 %v583_v4, %v567_v26 }
 0x14e   :  { %v628_v60 = vsel %vm472_vm0, %v625_v23, %v627_v57  ;;  %v643_v47 = vadd.f32 %v626_v21, %v588_v25 }
 0x14f   :  { %v644_v16 = vadd.f32 %v628_v60, %v589_v62  ;;  %599 = vst [vmem:[%s1479_s3 + $0x38] sm:$0x3f] %v591_v46  ;;  %v629_v8 = vrot.slane %v591_v46, 1 }
 0x150   :  { %v655_v1 = vld [vmem:[%s1479_s3 + $0x1] sm:$0xff]  ;;  %651 = vst [vmem:[%s1479_s3 + $0x20] sm:$0xff] %v643_v47 }
 0x151   :  { %v663_v39 = vadd.f32 %v655_v1, %v584_v6  ;;  %652 = vst [vmem:[%s1479_s3 + $0x28] sm:$0xff] %v644_v16  ;;  %v630_v24 = vsel %vm472_vm0, %v627_v57, %v629_v8 }
 0x152   :  { %v645_v31 = vadd.f32 %v630_v24, %v590_v29 }
 0x153   :  { %671 = vst [vmem:[%s1479_s3 + $0x1] sm:$0xff] %v663_v39  ;;  %v656_v38 = vld [vmem:[%s1479_s3 + $0x9] sm:$0xff] }
 0x154   :  { %v657_v14 = vld [vmem:[%s1479_s3 + $0x11] sm:$0xff]  ;;  %v664_v45 = vadd.f32 %v656_v38, %v585_v18  ;;  %653 = vst [vmem:[%s1479_s3 + $0x30] sm:$0xff] %v645_v31 }
 0x155   :  { %v665_v40 = vadd.f32 %v657_v14, %v586_v17 }
 0x156   :  { %672 = vst [vmem:[%s1479_s3 + $0x9] sm:$0xff] %v664_v45  ;;  %v607_v5 = vld [vmem:[%s1479_s3 + $0x38] sm:$0x1f] }
 0x157   :  { %673 = vst [vmem:[%s1479_s3 + $0x11] sm:$0xff] %v665_v40  ;;  %v658_v53 = vld [vmem:[%s1479_s3 + $0x19] sm:$0xff]  ;;  %v646_v34 = vadd.f32 %v629_v8, %v607_v5 }
 0x158   :  { %v659_v51 = vld [vmem:[%s1479_s3 + $0x21] sm:$0xff]  ;;  %v666_v44 = vadd.f32 %v658_v53, %v587_v22 }
 0x159   :  { %v667_v48 = vadd.f32 %v659_v51, %v588_v25  ;;  %654 = vst [vmem:[%s1479_s3 + $0x38] sm:$0x1f] %v646_v34 }
 0x15a   :  { %674 = vst [vmem:[%s1479_s3 + $0x19] sm:$0xff] %v666_v44 }
 0x15b   :  { %675 = vst [vmem:[%s1479_s3 + $0x21] sm:$0xff] %v667_v48  ;;  %v660_v0 = vld [vmem:[%s1479_s3 + $0x29] sm:$0xff] }
 0x15c   :  { %v668_v52 = vadd.f32 %v660_v0, %v589_v62 }
 0x15e   :  { %676 = vst [vmem:[%s1479_s3 + $0x29] sm:$0xff] %v668_v52 }
 0x160   :  { %v661_v63 = vld [vmem:[%s1479_s3 + $0x31] sm:$0xff]  ;;  %v662_v59 = vld [vmem:[%s1479_s3 + $0x39] sm:$0x1f] }
 0x161   :  { %v669_v33 = vadd.f32 %v661_v63, %v590_v29  ;;  %v670_v42 = vadd.f32 %v662_v59, %v591_v46 }
 0x163   :  { %677 = vst [vmem:[%s1479_s3 + $0x31] sm:$0xff] %v669_v33  ;;  %678 = vst [vmem:[%s1479_s3 + $0x39] sm:$0x1f] %v670_v42 }

</bundles_post_ra>
